<compile_context>
chip_gen: v7x
topology: tpu7x:2x2x1
jax: 0.10.0
libtpu: 0.0.40
codegen_flags: <defaults>
</compile_context>

<pallas_src>
import functools

import jax
import jax.numpy as jnp
from jax.experimental import pallas as pl
from jax.experimental.pallas import tpu as pltpu


def _nascell_kernel(x_ref,     # [TB, I]      inputs tile (f32)
                    h_ref,     # [TB, H]      hidden tile (f32)
                    w0x_ref,   # [I, 2H]      layer_0 weight, input rows   (bf16)
                    w0h_ref,   # [H, 2H]      layer_0 weight, hidden rows  (bf16)
                    w12_ref,   # [H, 4H]      [W1 | W2] packed on lane axis (bf16)
                    o_ref):    # [TB, H]
    f32 = jnp.float32
    bf16 = jnp.bfloat16

    H = h_ref.shape[-1]

    hf = h_ref[...].astype(f32)              # f32 hidden for gate arithmetic
    x_bf = x_ref[...].astype(bf16)
    h_bf = hf.astype(bf16)

    # layer_0: mixed = [x | h] @ W0  (done as two accumulating matmuls, no concat)
    y0 = jnp.dot(x_bf, w0x_ref[...], preferred_element_type=f32)
    y0 = y0 + jnp.dot(h_bf, w0h_ref[...], preferred_element_type=f32)   # [TB, 2H]

    h0 = y0[:, :H]                           # activations_0 = identity
    t0 = jax.nn.sigmoid(y0[:, H:])
    s0 = hf + t0 * (h0 - hf)                 # layer_inputs_0, f32

    # layer_1 and layer_2 fused: both consume s0.
    y12 = jnp.dot(s0.astype(bf16), w12_ref[...], preferred_element_type=f32)  # [TB, 4H]

    h1 = jnp.maximum(y12[:, 0 * H:1 * H], 0.0)       # relu
    t1 = jax.nn.sigmoid(y12[:, 1 * H:2 * H])
    h2 = jnp.maximum(y12[:, 2 * H:3 * H], 0.0)       # relu
    t2 = jax.nn.sigmoid(y12[:, 3 * H:4 * H])

    s1 = hf + t1 * (h1 - hf)                 # layer_inputs_1
    s2 = hf + t2 * (h2 - hf)                 # layer_inputs_2

    o_ref[...] = ((s1 + s2) * 0.5).astype(o_ref.dtype)


@jax.jit
def nascell_forward(inputs, hidden, params):
    """inputs: [B, I], hidden: [B, H]; params: dict of [in, out] weight matrices."""
    B, I = inputs.shape
    H = hidden.shape[-1]

    # Pack weights (lane-axis fusion for the two same-LHS matmuls) and cast to bf16
    # so MXU operands are single-pass and weight DMA traffic is halved.
    w0 = params["w0"]                        # [I+H, 2H]
    w0x = w0[:I, :].astype(jnp.bfloat16)     # [I, 2H]
    w0h = w0[I:, :].astype(jnp.bfloat16)     # [H, 2H]
    w12 = jnp.concatenate([params["w1"], params["w2"]], axis=1).astype(jnp.bfloat16)  # [H, 4H]

    # Batch tiling: shard across TensorCores when the batch is large; for the
    # small demo a single full-batch block is used.
    if B > 256 and B % 256 == 0:
        TB = 256
    else:
        TB = B
    grid = (B // TB,)

    batch_spec = lambda feat: pl.BlockSpec((TB, feat), lambda b: (b, 0))
    const_spec = lambda shape: pl.BlockSpec(shape, lambda b: (0, 0))

    return pl.pallas_call(
        _nascell_kernel,
        out_shape=jax.ShapeDtypeStruct((B, H), inputs.dtype),
        grid=grid,
        in_specs=[
            batch_spec(I),                   # inputs
            batch_spec(H),                   # hidden
            const_spec((I, 2 * H)),          # w0x (VMEM-resident across tiles)
            const_spec((H, 2 * H)),          # w0h
            const_spec((H, 4 * H)),          # [w1 | w2]
        ],
        out_specs=batch_spec(H),
        compiler_params=pltpu.CompilerParams(
            dimension_semantics=("parallel",)),
    )(inputs, hidden, w0x, w0h, w12)


def _ref_forward(inputs, hidden, params):
    """Pure-JAX f32 reference mirroring the torch NASCell3Layer.forward."""
    H = hidden.shape[-1]
    x = jnp.concatenate([inputs, hidden], axis=-1)

    y0 = x @ params["w0"]
    h0, t0 = y0[:, :H], jax.nn.sigmoid(y0[:, H:])
    s0 = hidden + t0 * (h0 - hidden)

    y1 = s0 @ params["w1"]
    h1, t1 = jax.nn.relu(y1[:, :H]), jax.nn.sigmoid(y1[:, H:])
    s1 = hidden + t1 * (h1 - hidden)

    y2 = s0 @ params["w2"]                   # layer_2 also consumes layer_inputs_0
    h2, t2 = jax.nn.relu(y2[:, :H]), jax.nn.sigmoid(y2[:, H:])
    s2 = hidden + t2 * (h2 - hidden)

    return (s1 + s2) / 2.0


def init_params(key, input_size, hidden_size, dtype=jnp.float32):
    """Weights stored as [in, out] (torch nn.Linear stores [out, in]);
    uniform(-1/sqrt(in), 1/sqrt(in)) like nn.Linear's default init, bias=False."""
    ni = input_size + hidden_size
    specs = {
        "w0": (ni, 2 * hidden_size),
        "w1": (hidden_size, 2 * hidden_size),
        "w2": (hidden_size, 2 * hidden_size),
    }
    params = {}
    keys = jax.random.split(key, len(specs))
    for k, (name, shape) in zip(keys, sorted(specs.items())):
        bound = 1.0 / (shape[0] ** 0.5)
        params[name] = jax.random.uniform(k, shape, dtype, -bound, bound)
    return params


if __name__ == "__main__":
    B, I, H = 8, 16, 32
    root = jax.random.PRNGKey(0)
    k_in, k_hid, k_par = jax.random.split(root, 3)

    inputs = jax.random.normal(k_in, (B, I), jnp.float32)
    hidden = jax.random.normal(k_hid, (B, H), jnp.float32)
    params = init_params(k_par, I, H)

    out = nascell_forward(inputs, hidden, params)
    out = jax.block_until_ready(out)

    ref = _ref_forward(inputs, hidden, params)
    assert out.shape == (B, H), out.shape
    # bf16 matmul operands vs f32 reference -> loose tolerance.
    assert jnp.allclose(out, ref, atol=5e-2, rtol=5e-2), float(jnp.max(jnp.abs(out - ref)))

    print("KERNEL_OK")
</pallas_src>

<mosaic_0001>
module attributes {stable_mosaic.version = 11 : i64} {
  func.func @_nascell_kernel(%arg0: i32, %arg1: memref<8x16xf32, #tpu.memory_space<vmem>>, %arg2: memref<8x32xf32, #tpu.memory_space<vmem>>, %arg3: memref<16x64xbf16, #tpu.memory_space<vmem>>, %arg4: memref<32x64xbf16, #tpu.memory_space<vmem>>, %arg5: memref<32x128xbf16, #tpu.memory_space<vmem>>, %arg6: memref<8x32xf32, #tpu.memory_space<vmem>>) attributes {dimension_semantics = [#tpu.dimension_semantics<parallel>], iteration_bounds = array<i64: 1>, scalar_prefetch = 0 : i64, scratch_operands = 0 : i64, tpu.core_type = #tpu.core_type<tc>, window_params = [{transform_indices = @transform_0, window_bounds = array<i64: 8, 16>}, {transform_indices = @transform_1, window_bounds = array<i64: 8, 32>}, {pipeline_mode = #tpu.pipeline_mode<synchronous>, transform_indices = @transform_2, window_bounds = array<i64: 16, 64>}, {pipeline_mode = #tpu.pipeline_mode<synchronous>, transform_indices = @transform_3, window_bounds = array<i64: 32, 64>}, {pipeline_mode = #tpu.pipeline_mode<synchronous>, transform_indices = @transform_4, window_bounds = array<i64: 32, 128>}, {transform_indices = @transform_5, window_bounds = array<i64: 8, 32>}]} {
    %c0 = arith.constant 0 : index
    %c0_0 = arith.constant 0 : index
    %0 = vector.load %arg2[%c0, %c0_0] : memref<8x32xf32, #tpu.memory_space<vmem>>, vector<8x32xf32>
    %c0_1 = arith.constant 0 : index
    %c0_2 = arith.constant 0 : index
    %1 = vector.load %arg1[%c0_1, %c0_2] : memref<8x16xf32, #tpu.memory_space<vmem>>, vector<8x16xf32>
    %2 = arith.truncf %1 : vector<8x16xf32> to vector<8x16xbf16>
    %3 = arith.truncf %0 : vector<8x32xf32> to vector<8x32xbf16>
    %c0_3 = arith.constant 0 : index
    %c0_4 = arith.constant 0 : index
    %4 = vector.load %arg3[%c0_3, %c0_4] : memref<16x64xbf16, #tpu.memory_space<vmem>>, vector<16x64xbf16>
    %cst = arith.constant dense<0.000000e+00> : vector<8x64xf32>
    %5 = tpu.matmul %2, %4, %cst {dimension_numbers = #tpu.dot_dimension_numbers<[1], [0], [0], [1], [0, 0, 1, 1], [], []>} : vector<8x16xbf16>, vector<16x64xbf16>, vector<8x64xf32> -> vector<8x64xf32>
    %c0_5 = arith.constant 0 : index
    %c0_6 = arith.constant 0 : index
    %6 = vector.load %arg4[%c0_5, %c0_6] : memref<32x64xbf16, #tpu.memory_space<vmem>>, vector<32x64xbf16>
    %cst_7 = arith.constant dense<0.000000e+00> : vector<8x64xf32>
    %7 = tpu.matmul %3, %6, %cst_7 {dimension_numbers = #tpu.dot_dimension_numbers<[1], [0], [0], [1], [0, 0, 1, 1], [], []>} : vector<8x32xbf16>, vector<32x64xbf16>, vector<8x64xf32> -> vector<8x64xf32>
    %8 = arith.addf %5, %7 : vector<8x64xf32>
    %9 = vector.extract_strided_slice %8 {offsets = [0, 0], sizes = [8, 32], strides = [1, 1]} : vector<8x64xf32> to vector<8x32xf32>
    %10 = vector.extract_strided_slice %8 {offsets = [0, 32], sizes = [8, 32], strides = [1, 1]} : vector<8x64xf32> to vector<8x32xf32>
    %11 = arith.negf %10 : vector<8x32xf32>
    %12 = math.exp %11 : vector<8x32xf32>
    %cst_8 = arith.constant 1.000000e+00 : f32
    %13 = vector.broadcast %cst_8 : f32 to vector<8x32xf32>
    %14 = arith.addf %13, %12 : vector<8x32xf32>
    %15 = arith.divf %13, %14 : vector<8x32xf32>
    %16 = arith.subf %9, %0 : vector<8x32xf32>
    %17 = arith.mulf %15, %16 : vector<8x32xf32>
    %18 = arith.addf %0, %17 : vector<8x32xf32>
    %19 = arith.truncf %18 : vector<8x32xf32> to vector<8x32xbf16>
    %c0_9 = arith.constant 0 : index
    %c0_10 = arith.constant 0 : index
    %20 = vector.load %arg5[%c0_9, %c0_10] : memref<32x128xbf16, #tpu.memory_space<vmem>>, vector<32x128xbf16>
    %cst_11 = arith.constant dense<0.000000e+00> : vector<8x128xf32>
    %21 = tpu.matmul %19, %20, %cst_11 {dimension_numbers = #tpu.dot_dimension_numbers<[1], [0], [0], [1], [0, 0, 1, 1], [], []>} : vector<8x32xbf16>, vector<32x128xbf16>, vector<8x128xf32> -> vector<8x128xf32>
    %22 = vector.extract_strided_slice %21 {offsets = [0, 0], sizes = [8, 32], strides = [1, 1]} : vector<8x128xf32> to vector<8x32xf32>
    %cst_12 = arith.constant 0.000000e+00 : f32
    %23 = vector.broadcast %cst_12 : f32 to vector<8x32xf32>
    %24 = arith.maximumf %22, %23 : vector<8x32xf32>
    %25 = vector.extract_strided_slice %21 {offsets = [0, 32], sizes = [8, 32], strides = [1, 1]} : vector<8x128xf32> to vector<8x32xf32>
    %26 = arith.negf %25 : vector<8x32xf32>
    %27 = math.exp %26 : vector<8x32xf32>
    %cst_13 = arith.constant 1.000000e+00 : f32
    %28 = vector.broadcast %cst_13 : f32 to vector<8x32xf32>
    %29 = arith.addf %28, %27 : vector<8x32xf32>
    %30 = arith.divf %28, %29 : vector<8x32xf32>
    %31 = vector.extract_strided_slice %21 {offsets = [0, 64], sizes = [8, 32], strides = [1, 1]} : vector<8x128xf32> to vector<8x32xf32>
    %cst_14 = arith.constant 0.000000e+00 : f32
    %32 = vector.broadcast %cst_14 : f32 to vector<8x32xf32>
    %33 = arith.maximumf %31, %32 : vector<8x32xf32>
    %34 = vector.extract_strided_slice %21 {offsets = [0, 96], sizes = [8, 32], strides = [1, 1]} : vector<8x128xf32> to vector<8x32xf32>
    %35 = arith.negf %34 : vector<8x32xf32>
    %36 = math.exp %35 : vector<8x32xf32>
    %cst_15 = arith.constant 1.000000e+00 : f32
    %37 = vector.broadcast %cst_15 : f32 to vector<8x32xf32>
    %38 = arith.addf %37, %36 : vector<8x32xf32>
    %39 = arith.divf %37, %38 : vector<8x32xf32>
    %40 = arith.subf %24, %0 : vector<8x32xf32>
    %41 = arith.mulf %30, %40 : vector<8x32xf32>
    %42 = arith.addf %0, %41 : vector<8x32xf32>
    %43 = arith.subf %33, %0 : vector<8x32xf32>
    %44 = arith.mulf %39, %43 : vector<8x32xf32>
    %45 = arith.addf %0, %44 : vector<8x32xf32>
    %46 = arith.addf %42, %45 : vector<8x32xf32>
    %cst_16 = arith.constant 5.000000e-01 : f32
    %47 = vector.broadcast %cst_16 : f32 to vector<8x32xf32>
    %48 = arith.mulf %46, %47 : vector<8x32xf32>
    %c0_17 = arith.constant 0 : index
    %c0_18 = arith.constant 0 : index
    %49 = vector.load %arg6[%c0_17, %c0_18] : memref<8x32xf32, #tpu.memory_space<vmem>>, vector<8x32xf32>
    tpu.vector_store %arg6[%c0_17, %c0_18], %48 {strides = array<i32>} : memref<8x32xf32, #tpu.memory_space<vmem>>, vector<8x32xf32>,
    return
  }
  func.func @transform_0(%arg0: i32) -> (i32, i32) {
    %c0_i32 = arith.constant 0 : i32
    %c0_i32_0 = arith.constant 0 : i32
    return %arg0, %c0_i32 : i32, i32
  }
  func.func @transform_1(%arg0: i32) -> (i32, i32) {
    %c0_i32 = arith.constant 0 : i32
    %c0_i32_0 = arith.constant 0 : i32
    return %arg0, %c0_i32 : i32, i32
  }
  func.func @transform_2(%arg0: i32) -> (i32, i32) {
    %c0_i32 = arith.constant 0 : i32
    %c0_i32_0 = arith.constant 0 : i32
    %c0_i32_1 = arith.constant 0 : i32
    return %c0_i32, %c0_i32_0 : i32, i32
  }
  func.func @transform_3(%arg0: i32) -> (i32, i32) {
    %c0_i32 = arith.constant 0 : i32
    %c0_i32_0 = arith.constant 0 : i32
    %c0_i32_1 = arith.constant 0 : i32
    return %c0_i32, %c0_i32_0 : i32, i32
  }
  func.func @transform_4(%arg0: i32) -> (i32, i32) {
    %c0_i32 = arith.constant 0 : i32
    %c0_i32_0 = arith.constant 0 : i32
    %c0_i32_1 = arith.constant 0 : i32
    return %c0_i32, %c0_i32_0 : i32, i32
  }
  func.func @transform_5(%arg0: i32) -> (i32, i32) {
    %c0_i32 = arith.constant 0 : i32
    %c0_i32_0 = arith.constant 0 : i32
    return %arg0, %c0_i32 : i32, i32
  }
}

</mosaic_0001>

<bundles_post_ra>
// kernel: nascell_forward.1
= control target key start
LH: loop header
LB: loop body
LE: loop exit
PB: predicated region body
PF: predicated region fallthrough
CT: control target
= control target key end

     0   :  { %v349_v1 = vmov 0.0   ;;  %vm350_vm0 = vmmov 0   ;;  %vm94_vm1 = vcmask 130048   ;;  %s438_s0 = inlined_call_operand.vmem [shape: f32[8,16], index: 0, kind: input, shape index: {}]   ;;  %s439_s1 = inlined_call_operand.vmem [shape: f32[8,32], index: 1, kind: input, shape index: {}]   ;;  %s440_s2 = inlined_call_operand.vmem [shape: bf16[16,64], index: 2, kind: input, shape index: {}]   ;;  %s441_s3 = inlined_call_operand.vmem [shape: bf16[32,64], index: 3, kind: input, shape index: {}]   ;;  %s442_s4 = inlined_call_operand.vmem [shape: bf16[32,128], index: 4, kind: input, shape index: {}]   ;;  %s443_s5 = inlined_call_operand.hbm [shape: f32[8,32], index: 5, kind: output, shape index: {}]  }
   0x1   :  { %v312_v0 = vld [vmem:[%s441_s3] sm:$0xff]   ;;  %283 = vmatprep.subr.bf16.mxu0 %v349_v1  ;;  %291 = vmatprep.subr.bf16.mxu1 %v349_v1  ;;  %v314_v3 = vld [vmem:[%s441_s3 + $0x8] sm:$0xff]  }
   0x2   :  { %v313_v2 = vld [vmem:[%s440_s2] sm:$0xff]   ;;  %284 = vmatpush3.bf16.msra.mxu0 %v312_v0  ;;  %293 = vmatprep.mubr.msk.bf16.mxu1 %vm350_vm0, %v349_v1 }
   0x3   :  { %292 = vmatpush3.bf16.msra.mxu1 %v313_v2  ;;  %285 = vmatprep.subr.bf16.mxu0 %v349_v1  ;;  %v23_v4 = vld [vmem:[%s438_s0] sm:$0xff] }
   0x4   :  { %v401_v5 = vld [vmem:[%s439_s1] sm:$0xff]  ;;  %v24_v6 = vpack.c.bf16 %v23_v4, %v23_v4  ;;  %287 = vmatprep.mubr.msk.bf16.mxu0 %vm350_vm0, %v349_v1  ;;  %297 = vmatprep.subr.bf16.mxu1 %v349_v1 }
   0x5   :  { %v25_v7 = vpack.c.bf16 %v401_v5, %v401_v5 }
   0x6   :  { %10 = vsyncpa [#allocation3], 0  ;;  %286 = vmatpush3.bf16.msra.mxu0 %v314_v3  ;;  %294 = vmatmul.mubr.msk.bf16.vlgmr.msra.gmra.mrb[0].mxu1 %vm94_vm1, %v24_v6  ;;  %vm44_vm2 = vcmask 261120   ;;  %v315_v8 = vld [vmem:[%s442_s4] sm:$0xff]   ;;  %s351_s1 = smov 32   ;;  %v316_v22 = vld [vmem:[%s442_s4 + $0x8] sm:$0xff]  }
   0x7   :  { %301 = vmatprep.mubr.msk.bf16.mxu1 %vm350_vm0, %v349_v1  ;;  %298 = vmatpush3.bf16.msra.mxu1 %v315_v8  ;;  %s352_s29 = smov 64   ;;  %s353_s30 = smov 96  }
   0x8   :  { %299 = vmatprep.subr.bf16.mxu1 %v349_v1  ;;  %234 = vrot.lane.b32.xlu1 %v401_v5, %s352_s29  ;;  %s354_s4 = smov [#allocation2]  }
   0x9   :  { %288 = vmatmul.mubr.msk.bf16.vlgmr.msra.gmra.mrb[0].mxu0 %vm44_vm2, %v25_v7  ;;  %s257_s6 = sshll.u32 %s354_s4, 4  ;;  %s258_s6 = int_to_ptr.vmem [resolvable:$true] %s257_s6 }
   0xa   :  { %s325_s7 = scalar_lea.vmem %s258_s6, 128  ;;  %p330_p1 = scmp.lt.s32.totalorder %s258_s6, %s258_s6 }
   0xb   :  { %300 = vmatpush3.bf16.msra.mxu1 %v316_v22  ;;  %p326_p0 = scmp.ne.s32.totalorder %s258_s6, %s325_s7  ;;  %p331_p2 = scmp.lt.s32.totalorder %s325_s7, %s325_s7 }
   0xd   :  { %p332_p3 = por %p331_p2, %p330_p1 }
   0xf   :  { %p333_p4 = pnand %p332_p3, %p326_p0 }
  0x7a   :  { %v235_v30 = vpop.permute.xlu1 %234 }
  0xd9   :  { %v132_v9 = vpop.f32.mrb[0].mxu1 }
  0xda   :  { %v295_v10 = vpop.f32.mrb[1].mxu1 }
  0xdb   :  { %v135_v11 = vpop.f32.mrb[2].mxu1 }
  0xdc   :  { %v82_v12 = vpop.f32.mrb[0].mxu0  ;;  %v296_v13 = vpop.f32.mrb[3].mxu1 }
  0xdd   :  { %v133_v14 = vadd.f32 %v132_v9, %v82_v12  ;;  %v289_v15 = vpop.f32.mrb[1].mxu0 }
  0xde   :  { %v85_v16 = vpop.f32.mrb[2].mxu0 }
  0xdf   :  { %v290_v17 = vpop.f32.mrb[3].mxu0  ;;  %v144_v18 = vsub.f32 %v133_v14, %v401_v5  ;;  %v270_v19 = vmul.f32 -1.442695, %v133_v14 }
  0xe1   :  { %146 = vrot.lane.b32.xlu0 %v144_v18, %s351_s1  ;;  %317 = vpow2.f32 %v270_v19 }
  0xeb   :  { %v318_v20 = vpop.eup %317 }
  0xec   :  { %v141_v21 = vadd.f32 1.0, %v318_v20 }
  0xee   :  { %319 = vrcp.f32 %v141_v21 }
  0xf8   :  { %v320_v23 = vpop.eup %319 }
 0x153   :  { %v147_v24 = vpop.permute.xlu0 %146 }
 0x154   :  { %v149_v25 = vmul.f32 %v320_v23, %v147_v24 }
 0x156   :  { %151 = vrot.lane.b32.xlu0 %v149_v25, %s353_s30 }
 0x1c8   :  { %v152_v26 = vpop.permute.xlu0 %151 }
 0x1c9   :  { %v154_v27 = vadd.f32 %v152_v26, %v401_v5 }
 0x1cb   :  { %v155_v28 = vpack.c.bf16 %v154_v27, %v154_v27 }
 0x1cd   :  { %302 = vmatmul.mubr.msk.bf16.vlgmr.msra.gmra.mrb[4].mxu1 %vm44_vm2, %v155_v28 }
 0x2a0   :  { %v209_v29 = vpop.f32.mrb[4].mxu1 }
 0x2a1   :  { %v215_v31 = vmax.f32 %v209_v29, 0.0  ;;  %v303_v32 = vpop.f32.mrb[5].mxu1  ;;  %v274_v37 = vmul.f32 -1.442695, %v209_v29 }
 0x2a2   :  { %v212_v33 = vpop.f32.mrb[6].mxu1 }
 0x2a3   :  { %v222_v34 = vsub.f32 %v215_v31, %v401_v5  ;;  %v237_v35 = vsub.f32 %v215_v31, %v235_v30  ;;  %v304_v36 = vpop.f32.mrb[7].mxu1  ;;  %321 = vpow2.f32 %v274_v37 }
 0x2a5   :  { %239 = vrot.lane.b32.xlu0 %v237_v35, %s351_s1  ;;  %224 = vrot.lane.b32.xlu1 %v222_v34, %s351_s1 }
 0x2ad   :  { %v322_v38 = vpop.eup %321 }
 0x2ae   :  { %v219_v39 = vadd.f32 1.0, %v322_v38 }
 0x2b0   :  { %323 = vrcp.f32 %v219_v39 }
 0x2ba   :  { %v324_v40 = vpop.eup %323 }
 0x317   :  { %v240_v41 = vpop.permute.xlu0 %239  ;;  %v225_v42 = vpop.permute.xlu1 %224 }
 0x318   :  { %v242_v43 = vmul.f32 %v324_v40, %v240_v41  ;;  %v227_v44 = vmul.f32 %v324_v40, %v225_v42 }
 0x31a   :  { %244 = vrot.lane.b32.xlu0 %v242_v43, %s351_s1  ;;  %229 = vrot.lane.b32.xlu1 %v227_v44, %s353_s30 }
 0x38c   :  { %v245_v45 = vpop.permute.xlu0 %244  ;;  %v230_v46 = vpop.permute.xlu1 %229 }
 0x38d   :  { %v247_v47 = vadd.f32 %v245_v45, %v401_v5  ;;  %v232_v48 = vadd.f32 %v230_v46, %v401_v5 }
 0x38f   :  { %v248_v49 = vadd.f32 %v247_v47, %v232_v48 }
 0x391   :  { %v249_v50 = vmul.f32 0.5, %v248_v49 }
 0x393   :  { %250 = vst.msk [vmem:[#allocation2] sm:$0xff] %vm44_vm2, %v249_v50 }
 0x394   :  { %336 = shalt.err (!%p333_p4)
}
 0x395   :  { %s337_s10 = scalar_lea.hbm %s443_s5, 128 }
 0x396   :  { %p338_p5 = scmp.ne.s32.totalorder %s443_s5, %s337_s10  ;;  %p341_p6 = scmp.lt.u32.totalorder %s337_s10, %s443_s5 }
 0x398   :  { %p343_p7 = pnand %p341_p6, %p338_p5 }
 0x39a   :  { %346 = shalt.err (!%p343_p7)
}
 0x39b   :  { %260 = dma.vmem_to_hbm [thread:$0]  %s258_s6, 128, %s443_s5, [#allocation3]  }
 0x39c   :  { %347 = dma.done.wait [#allocation3], 128  }
 0x39d   :  { %348 = vsyncadd [#allocation3], 4294967168 }
 0x39e   :  { %264 = vsyncpa [#allocation3], 1 }

</bundles_post_ra>
